<compile_context>
chip_gen: v5e
topology: v5e:2x2
jax: 0.10.0
libtpu: 0.0.40
codegen_flags: <defaults>
</compile_context>

<pallas_src>
import functools

import jax
import jax.numpy as jnp
from jax.experimental import pallas as pl
from jax.experimental.pallas import tpu as pltpu


def _autoencoder_kernel(x_ref, w1_ref, b1_ref, w2_ref, b2_ref, o_ref, *, spike_output):
    # x_ref : (1, TN)          flattened input tile
    # w1_ref: (step, 1)        fc1 weight (out_features=step, in_features=1)
    # b1_ref: (step, 1)        fc1 bias (as a column)
    # w2_ref: (step, step)     fc2 weight
    # b2_ref: (step, 1)        fc2 bias (as a column)
    # o_ref : (step, TN)       output tile (already transposed, like PyTorch .transpose_(1,0))
    x = x_ref[...]                                              # (1, TN) f32
    # fc1 + ReLU, computed directly in transposed layout: (step, TN)
    h = jnp.maximum(w1_ref[...] * x + b1_ref[...], 0.0)
    # fc2 (transposed): W2 @ h + b2  -> (step, TN).  MXU is <1% utilized at
    # step=8 but the kernel is HBM-bound, so this is not the binding slot.
    y = jnp.dot(w2_ref[...], h, preferred_element_type=jnp.float32) + b2_ref[...]
    s = jax.nn.sigmoid(y)
    if spike_output:
        # GateGrad surrogate forward in braincog is heaviside on the sigmoid
        # output: (sigmoid(y) > 0).float().  Kept verbatim for semantic
        # fidelity even though sigmoid(y) > 0 is almost always 1.
        # TODO(synk): confirm whether a 0.5 threshold / pre-activation heaviside was intended upstream.
        s = (s > 0.0).astype(jnp.float32)
    o_ref[...] = s.astype(o_ref.dtype)


def auto_encoder_forward(x, w1, b1, w2, b2, *, spike_output=True, tile_n=16384,
                         out_dtype=jnp.float32):
    """Pallas implementation of AutoEncoder.forward.

    x : any-shape float array (e.g. NCHW image batch)
    w1: (step, 1), b1: (step,), w2: (step, step), b2: (step,)
    returns: (step, *x.shape) with dtype `out_dtype`
    """
    step = w1.shape[0]
    orig_shape = tuple(x.shape)
    n = int(x.size)

    # Pick a lane-aligned tile: large to amortize per-grid-step overhead
    # (~0.35 us/step), but capped so small inputs still get ~4 grid steps
    # (keeps both v7x TensorCores busy). Always a multiple of 128.
    four_way = pl.cdiv(pl.cdiv(n, 4), 128) * 128
    tn = max(128, min(int(tile_n), max(512, four_way)))
    grid = (pl.cdiv(n, tn),)

    # Metadata-only reshapes / no-op casts: no extra HBM passes in the wrapper.
    xf = x.reshape(1, n).astype(jnp.float32)
    w1c = w1.reshape(step, 1).astype(jnp.float32)
    b1c = b1.reshape(step, 1).astype(jnp.float32)
    w2c = w2.reshape(step, step).astype(jnp.float32)
    b2c = b2.reshape(step, 1).astype(jnp.float32)

    kernel = functools.partial(_autoencoder_kernel, spike_output=spike_output)

    out = pl.pallas_call(
        kernel,
        out_shape=jax.ShapeDtypeStruct((step, n), out_dtype),
        grid_spec=pltpu.PrefetchScalarGridSpec(
            num_scalar_prefetch=0,
            grid=grid,
            in_specs=[
                pl.BlockSpec((1, tn), lambda i: (0, i)),        # x tile
                pl.BlockSpec((step, 1), lambda i: (0, 0)),      # w1 (full, resident)
                pl.BlockSpec((step, 1), lambda i: (0, 0)),      # b1
                pl.BlockSpec((step, step), lambda i: (0, 0)),   # w2
                pl.BlockSpec((step, 1), lambda i: (0, 0)),      # b2
            ],
            out_specs=pl.BlockSpec((step, tn), lambda i: (0, i)),
        ),
        compiler_params=pltpu.CompilerParams(
            dimension_semantics=("parallel",),
        ),
    )(xf, w1c, b1c, w2c, b2c)

    # (step, N) -> (step, *x.shape) is contiguous: free reshape, no slice.
    return out.reshape((step,) + orig_shape)


def _reference(x, w1, b1, w2, b2, *, spike_output=True):
    """Plain-JAX reference mirroring the PyTorch forward."""
    shape = x.shape
    step = w1.shape[0]
    xv = x.reshape(-1, 1).astype(jnp.float32)                   # (N, 1)
    h = jnp.maximum(xv @ w1.T + b1, 0.0)                        # (N, step)
    y = (h @ w2.T + b2).T                                       # (step, N)
    s = jax.nn.sigmoid(y)
    if spike_output:
        s = (s > 0.0).astype(jnp.float32)
    return s.reshape((step,) + tuple(shape))


if __name__ == "__main__":
    step = 8

    key = jax.random.PRNGKey(0)
    kx, k1, k2, k3, k4 = jax.random.split(key, 5)

    # Small NCHW input, consistent with feeding an image batch to the encoder.
    x = jax.random.normal(kx, (2, 4, 16, 16), jnp.float32)

    # Deterministic parameter init (PyTorch-Linear-like uniform scaling).
    w1 = jax.random.uniform(k1, (step, 1), jnp.float32, -1.0, 1.0)          # fan_in = 1
    b1 = jax.random.uniform(k2, (step,), jnp.float32, -1.0, 1.0)
    lim2 = 1.0 / (step ** 0.5)
    w2 = jax.random.uniform(k3, (step, step), jnp.float32, -lim2, lim2)
    b2 = jax.random.uniform(k4, (step,), jnp.float32, -lim2, lim2)

    # Spike path (default f32 output), checked against the reference.
    out = auto_encoder_forward(x, w1, b1, w2, b2, spike_output=True)
    out = jax.block_until_ready(out)
    ref = _reference(x, w1, b1, w2, b2, spike_output=True)
    assert out.shape == (step,) + x.shape, out.shape
    assert jnp.allclose(out, ref, atol=1e-5, rtol=1e-5), "mismatch vs reference (spike)"

    # Non-spiking (sigmoid-rate) path.
    out_rate = jax.block_until_ready(
        auto_encoder_forward(x, w1, b1, w2, b2, spike_output=False)
    )
    ref_rate = _reference(x, w1, b1, w2, b2, spike_output=False)
    assert jnp.allclose(out_rate, ref_rate, atol=1e-5, rtol=1e-5), "mismatch (rate path)"

    # Narrow-output option (halves dominant HBM write traffic); exact for the
    # 0/1 spike values, so compare exactly after upcast.
    out_bf16 = jax.block_until_ready(
        auto_encoder_forward(x, w1, b1, w2, b2, spike_output=True, out_dtype=jnp.bfloat16)
    )
    assert out_bf16.dtype == jnp.bfloat16
    assert jnp.array_equal(out_bf16.astype(jnp.float32), ref), "mismatch (bf16 spike path)"

    print("KERNEL_OK")
</pallas_src>

<mosaic_0001>
module attributes {stable_mosaic.version = 11 : i64} {
  func.func @_autoencoder_kernel(%arg0: i32, %arg1: memref<1x512xf32, #tpu.memory_space<vmem>>, %arg2: memref<8x1xf32, #tpu.memory_space<vmem>>, %arg3: memref<8x1xf32, #tpu.memory_space<vmem>>, %arg4: memref<8x8xf32, #tpu.memory_space<vmem>>, %arg5: memref<8x1xf32, #tpu.memory_space<vmem>>, %arg6: memref<8x512xf32, #tpu.memory_space<vmem>>) attributes {dimension_semantics = [#tpu.dimension_semantics<parallel>], iteration_bounds = array<i64: 4>, scalar_prefetch = 0 : i64, scratch_operands = 0 : i64, tpu.core_type = #tpu.core_type<tc>, window_params = [{transform_indices = @transform_0, window_bounds = array<i64: 1, 512>}, {pipeline_mode = #tpu.pipeline_mode<synchronous>, transform_indices = @transform_1, window_bounds = array<i64: 8, 1>}, {pipeline_mode = #tpu.pipeline_mode<synchronous>, transform_indices = @transform_2, window_bounds = array<i64: 8, 1>}, {pipeline_mode = #tpu.pipeline_mode<synchronous>, transform_indices = @transform_3, window_bounds = array<i64: 8, 8>}, {pipeline_mode = #tpu.pipeline_mode<synchronous>, transform_indices = @transform_4, window_bounds = array<i64: 8, 1>}, {transform_indices = @transform_5, window_bounds = array<i64: 8, 512>}]} {
    %c0 = arith.constant 0 : index
    %c0_0 = arith.constant 0 : index
    %0 = vector.load %arg1[%c0, %c0_0] : memref<1x512xf32, #tpu.memory_space<vmem>>, vector<1x512xf32>
    %c0_1 = arith.constant 0 : index
    %c0_2 = arith.constant 0 : index
    %1 = vector.load %arg2[%c0_1, %c0_2] : memref<8x1xf32, #tpu.memory_space<vmem>>, vector<8x1xf32>
    %2 = vector.broadcast %1 : vector<8x1xf32> to vector<8x512xf32>
    %3 = vector.broadcast %0 : vector<1x512xf32> to vector<8x512xf32>
    %4 = arith.mulf %2, %3 : vector<8x512xf32>
    %c0_3 = arith.constant 0 : index
    %c0_4 = arith.constant 0 : index
    %5 = vector.load %arg3[%c0_3, %c0_4] : memref<8x1xf32, #tpu.memory_space<vmem>>, vector<8x1xf32>
    %6 = vector.broadcast %5 : vector<8x1xf32> to vector<8x512xf32>
    %7 = arith.addf %4, %6 : vector<8x512xf32>
    %cst = arith.constant 0.000000e+00 : f32
    %8 = vector.broadcast %cst : f32 to vector<8x512xf32>
    %9 = arith.maximumf %7, %8 : vector<8x512xf32>
    %c0_5 = arith.constant 0 : index
    %c0_6 = arith.constant 0 : index
    %10 = vector.load %arg4[%c0_5, %c0_6] : memref<8x8xf32, #tpu.memory_space<vmem>>, vector<8x8xf32>
    %cst_7 = arith.constant dense<0.000000e+00> : vector<8x512xf32>
    %11 = tpu.matmul %10, %9, %cst_7 {dimension_numbers = #tpu.dot_dimension_numbers<[1], [0], [0], [1], [0, 0, 1, 1], [], []>} : vector<8x8xf32>, vector<8x512xf32>, vector<8x512xf32> -> vector<8x512xf32>
    %c0_8 = arith.constant 0 : index
    %c0_9 = arith.constant 0 : index
    %12 = vector.load %arg5[%c0_8, %c0_9] : memref<8x1xf32, #tpu.memory_space<vmem>>, vector<8x1xf32>
    %13 = vector.broadcast %12 : vector<8x1xf32> to vector<8x512xf32>
    %14 = arith.addf %11, %13 : vector<8x512xf32>
    %15 = arith.negf %14 : vector<8x512xf32>
    %16 = math.exp %15 : vector<8x512xf32>
    %cst_10 = arith.constant 1.000000e+00 : f32
    %17 = vector.broadcast %cst_10 : f32 to vector<8x512xf32>
    %18 = arith.addf %17, %16 : vector<8x512xf32>
    %19 = arith.divf %17, %18 : vector<8x512xf32>
    %cst_11 = arith.constant 0.000000e+00 : f32
    %20 = vector.broadcast %cst_11 : f32 to vector<8x512xf32>
    %21 = arith.cmpf ogt, %19, %20 : vector<8x512xf32>
    %22 = arith.extui %21 : vector<8x512xi1> to vector<8x512xi32>
    %23 = arith.sitofp %22 : vector<8x512xi32> to vector<8x512xf32>
    %c0_12 = arith.constant 0 : index
    %c0_13 = arith.constant 0 : index
    %24 = vector.load %arg6[%c0_12, %c0_13] : memref<8x512xf32, #tpu.memory_space<vmem>>, vector<8x512xf32>
    tpu.vector_store %arg6[%c0_12, %c0_13], %23 {strides = array<i32>} : memref<8x512xf32, #tpu.memory_space<vmem>>, vector<8x512xf32>,
    return
  }
  func.func @transform_0(%arg0: i32) -> (i32, i32) {
    %c0_i32 = arith.constant 0 : i32
    %c0_i32_0 = arith.constant 0 : i32
    return %c0_i32, %arg0 : i32, i32
  }
  func.func @transform_1(%arg0: i32) -> (i32, i32) {
    %c0_i32 = arith.constant 0 : i32
    %c0_i32_0 = arith.constant 0 : i32
    %c0_i32_1 = arith.constant 0 : i32
    return %c0_i32, %c0_i32_0 : i32, i32
  }
  func.func @transform_2(%arg0: i32) -> (i32, i32) {
    %c0_i32 = arith.constant 0 : i32
    %c0_i32_0 = arith.constant 0 : i32
    %c0_i32_1 = arith.constant 0 : i32
    return %c0_i32, %c0_i32_0 : i32, i32
  }
  func.func @transform_3(%arg0: i32) -> (i32, i32) {
    %c0_i32 = arith.constant 0 : i32
    %c0_i32_0 = arith.constant 0 : i32
    %c0_i32_1 = arith.constant 0 : i32
    return %c0_i32, %c0_i32_0 : i32, i32
  }
  func.func @transform_4(%arg0: i32) -> (i32, i32) {
    %c0_i32 = arith.constant 0 : i32
    %c0_i32_0 = arith.constant 0 : i32
    %c0_i32_1 = arith.constant 0 : i32
    return %c0_i32, %c0_i32_0 : i32, i32
  }
  func.func @transform_5(%arg0: i32) -> (i32, i32) {
    %c0_i32 = arith.constant 0 : i32
    %c0_i32_0 = arith.constant 0 : i32
    return %c0_i32, %arg0 : i32, i32
  }
}

</mosaic_0001>

<bundles_post_ra>
// kernel: tpu_custom_call.1
= control target key start
LH: loop header
LB: loop body
LE: loop exit
PB: predicated region body
PF: predicated region fallthrough
CT: control target
= control target key end

     0   :  { %10 = vsyncpa [#allocation3], 0  ;;  %s808_s0 = inlined_call_operand.vmem [shape: f32[1,2048], index: 0, kind: input, shape index: {}]   ;;  %s809_s1 = inlined_call_operand.vmem [shape: f32[8,1], index: 1, kind: input, shape index: {}]   ;;  %s810_s2 = inlined_call_operand.vmem [shape: f32[8,1], index: 2, kind: input, shape index: {}]   ;;  %s811_s3 = inlined_call_operand.vmem [shape: f32[8,8], index: 3, kind: input, shape index: {}]   ;;  %s812_s4 = inlined_call_operand.vmem [shape: f32[8,1], index: 4, kind: input, shape index: {}]   ;;  %s813_s5 = inlined_call_operand.hbm [shape: f32[8,2048], index: 5, kind: output, shape index: {}]  }
   0x1   :  { %12 = vsyncpa [#allocation3 + $0x1], 0  ;;  %s692_s18 = smov 0   ;;  %s694_s19 = smov 0  }
   0x2   :  { %s696_s20 = smov 0   ;;  %s698_s21 = smov 0  }
   0x3 LB: > { %s713_s22 = sadd.s32 4294967295, %s658_s21   ;;  %s513_s23 = sadd.s32 4294967294, %s658_s21   ;;  %s658_s21 = sphi %s698_s21, %s819_s21   ;;  %s654_s20 = sphi %s696_s20, %s818_s20   ;;  %s650_s19 = sphi %s694_s19, %s817_s19   ;;  %s646_s18 = sphi %s692_s18, %s816_s18  }
   0x4   : > { %s717_s24 = sadd.s32 1, %s658_s21   ;;  %s135_s25 = sadd.s32 1, %s654_s20 }
   0x5   : > { %s132_s26 = ssub.s32 %s658_s21, %s717_s24  ;;  %p145_p0 = scmp.ne.s32.totalorder %s654_s20, %s650_s19 }
   0x6   : > { %p133_p1 = scmp.eq.s32.totalorder %s132_s26, 0  ;;  %p146_p2 = scmp.eq.s32.totalorder %s713_s22, 3 }
   0x7   : > { %p151_p3 = scmp.ne.s32.totalorder %s650_s19, %s646_s18  ;;  %p152_p4 = scmp.eq.s32.totalorder %s513_s23, 3 }
   0x8   : > { %s728_s27 = scalar_select %p133_p1, %s654_s20, %s135_s25  }
   0x9   : > { %p730_p5 = por %p146_p2, %p145_p0  ;;  %p734_p6 = por %p152_p4, %p151_p3 }
   0xa   : > { %p516_p7 = scmp.ge.s32.totalorder %s658_s21, 1  ;;  %p190_p8 = scmp.lt.s32.totalorder %s658_s21, 5 }
   0xc   : > { %p191_p9 = pnand %p516_p7, %p190_p8 }
   0xd   : > { %s518_s11 = sshll.u32 (!%p191_p9), %s713_s22, 2  ;;  %s214_s17 = sand.u32 (!%p191_p9), 1, %s650_s19  }
   0xe   : > { %194 = sbr.rel (%p191_p9) target bundleno = 319 (0x13f), region = 40  ;;  %p218_p10 = scmp.lt.s32.totalorder (!%p191_p9), %s518_s11, 15 }
   0xf   : > { %s517_s23 = sshll.u32 (!%p191_p9), %s214_s17, 5  ;;  %s536_s25 = sshll.u32 (!%p191_p9), %s713_s22, 5 }
  0x10   : > { %s216_s26 = scalar_lea.vmem (!%p191_p9), [#allocation2], %s517_s23  ;;  %s452_s6 = scalar_lea.hbm (!%p191_p9), %s813_s5, %s536_s25 }
  0x11   : > { %s454_s7 = sshll.u32 (!%p191_p9), %s216_s26, 4  ;;  %s456_s8 = sshll.u32 (!%p191_p9), %s452_s6, 4  ;;  %s455_s7 = int_to_ptr.vmem [resolvable:$true] %s454_s7  ;;  %s457_s8 = int_to_ptr.hbm [resolvable:$true] %s456_s8 }
  0x12   : > { %s441_s9 = scalar_lea.sflag (!%p191_p9), [#allocation3], %s214_s17  ;;  %s610_s10 = sshra.s32 (!%p191_p9), %s457_s8, 4  ;;  %s611_s10 = int_to_ptr.hbm [resolvable:$true] %s610_s10 }
  0x13   : > { %v224_v0 = vld [vmem:[%s809_s1] sm:$0xff]  ;;  %v660_v1 = vmov 0   ;;  %s821_s11 = smov (!%p218_p10, %s518_s11), 15  ;;  %vm264_vm0 = vcmask 64512   ;;  %p617_p0 = scmp.lt.s32.totalorder %s611_s10, %s813_s5 }
  0x14   : > { %578 = vset.pattern.permute.xlu0 %v660_v1  ;;  %579 = vset.pattern.permute.xlu1 %v660_v1  ;;  %v243_v2 = vld [vmem:[%s810_s2] sm:$0xff]  ;;  %s220_s14 = scalar_lea.vmem %s808_s0, %s821_s11  ;;  %s612_s11 = scalar_lea.hbm %s611_s10, 32 }
  0x15   : > { %227 = vperm.xlu0 %578, %v224_v0   ;;  %v258_v3 = vld [vmem:[%s812_s4] sm:$0xff]  ;;  %p613_p11 = scmp.ne.s32.totalorder %s611_s10, %s612_s11 }
  0x16   : > { %261 = vperm.xlu1 %579, %v258_v3   ;;  %v223_v5 = vld [vmem:[%s220_s14] sm:$0xf]  ;;  %s616_s14 = scalar_lea.hbm %s813_s5, 128 }
  0x17   : > { %v231_v6 = vperm.slane %v223_v5, 0  ;;  %v232_v7 = vperm.slane %v223_v5, 1  ;;  %v233_v8 = vperm.slane %v223_v5, 2  ;;  %v234_v9 = vperm.slane %v223_v5, 3  ;;  %v257_v23 = vld [vmem:[%s811_s3] sm:$0xff]  ;;  %p614_p12 = pnand %p613_p11, %p730_p5  ;;  %p618_p1 = scmp.lt.s32.totalorder %s616_s14, %s612_s11 }
  0x19   : > { %p615_p13 = pneg %p614_p12  ;;  %p619_p2 = por %p618_p1, %p617_p0 }
  0x1b   : > { %p620_p3 = pnand %p619_p2, %p615_p13 }
  0x1d   : > { %246 = vperm.xlu0 %578, %v243_v2  }
  0x87   : > { %v228_v4 = vpop.permute.xlu0 %227 }
  0x88   : > { %v239_v10 = vmul.f32 %v231_v6, %v228_v4  ;;  %v240_v11 = vmul.f32 %v232_v7, %v228_v4  ;;  %v241_v12 = vmul.f32 %v233_v8, %v228_v4  ;;  %v242_v13 = vmul.f32 %v234_v9, %v228_v4  ;;  %v262_v24 = vpop.permute.xlu1 %261 }
  0x8f   : > { %v247_v14 = vpop.permute.xlu0 %246 }
  0x90   : > { %v249_v15 = vadd.f32 %v247_v14, %v239_v10  ;;  %v250_v16 = vadd.f32 %v247_v14, %v240_v11  ;;  %v251_v17 = vadd.f32 %v247_v14, %v241_v12  ;;  %v252_v18 = vadd.f32 %v247_v14, %v242_v13 }
  0x91   : > { %v661_v10 = vmov 0.0  }
  0x92   : > { %v253_v19 = vmax.f32 %v249_v15, 0.0  ;;  %v254_v20 = vmax.f32 %v250_v16, 0.0  ;;  %v255_v21 = vmax.f32 %v251_v17, 0.0  ;;  %v256_v22 = vmax.f32 %v252_v18, 0.0 }
  0x94   : > { %283 = vmatpush.msra.mxu0 %v253_v19  ;;  %303 = vmatpush.msra.mxu1 %v254_v20 }
  0x95   : > { %323 = vmatpush.msra.mxu2 %v255_v21  ;;  %343 = vmatpush.msra.mxu3 %v256_v22 }
  0x96   : > { %519 = vmatmul.msk.f32.vlgmr.msra.gmra.mxu0 %vm264_vm0, %v257_v23  ;;  %520 = vmatmul.msk.f32.vlgmr.msra.gmra.mxu1 %vm264_vm0, %v257_v23 }
  0x97   : > { %521 = vmatmul.msk.f32.vlgmr.msra.gmra.mxu2 %vm264_vm0, %v257_v23  ;;  %522 = vmatmul.msk.f32.vlgmr.msra.gmra.mxu3 %vm264_vm0, %v257_v23 }
 0x113   : > { %v285_v25 = vpop.f32.mrf.mxu0  ;;  %v305_v26 = vpop.f32.mrf.mxu1 }
 0x114   : > { %v286_v27 = vadd.f32 %v285_v25, %v262_v24  ;;  %v306_v28 = vadd.f32 %v305_v26, %v262_v24 }
 0x116   : > { %v523_v29 = vmul.f32 -1.442695, %v286_v27  ;;  %v524_v30 = vmul.f32 -1.442695, %v306_v28 }
 0x118   : > { %580 = vpow2.f32 %v523_v29 }
 0x119   : > { %582 = vpow2.f32 %v524_v30 }
 0x11a   : > { %v325_v31 = vpop.f32.mrf.mxu2  ;;  %v345_v32 = vpop.f32.mrf.mxu3 }
 0x11b   : > { %v326_v33 = vadd.f32 %v325_v31, %v262_v24  ;;  %v346_v34 = vadd.f32 %v345_v32, %v262_v24 }
 0x11d   : > { %v525_v35 = vmul.f32 -1.442695, %v326_v33  ;;  %v526_v36 = vmul.f32 -1.442695, %v346_v34 }
 0x11e   : > { %v581_v37 = vpop.eup %580 }
 0x11f   : > { %v583_v38 = vpop.eup %582  ;;  %v360_v39 = vadd.f32 1.0, %v581_v37  ;;  %584 = vpow2.f32 %v525_v35 }
 0x120   : > { %v361_v40 = vadd.f32 1.0, %v583_v38  ;;  %586 = vpow2.f32 %v526_v36 }
 0x121   : > { %588 = vrcp.f32 %v360_v39  ;;  %vm369_vm1 = vweird.f32 %v360_v39  ;;  %v373_v50 = vand.u32 2147483647, %v360_v39  ;;  %v375_v51 = vand.u32 2147483648, %v360_v39 }
 0x122   : > { %590 = vrcp.f32 %v361_v40  ;;  %v388_v54 = vand.u32 2147483647, %v361_v40  ;;  %v390_v55 = vand.u32 2147483648, %v361_v40  ;;  %vm384_vm3 = vweird.f32 %v361_v40 }
 0x123   : > { %v376_v59 = vor.u32 1.1754944e-38, %v375_v51  ;;  %vm374_vm6 = vcmp.eq.f32.partialorder %v373_v50, 8.507059e+37 }
 0x124   : > { %v391_v63 = vor.u32 1.1754944e-38, %v390_v55  ;;  %vm389_vm7 = vcmp.eq.f32.partialorder %v388_v54, 8.507059e+37 }
 0x125   : > { %v585_v41 = vpop.eup %584 }
 0x126   : > { %v587_v42 = vpop.eup %586  ;;  %v756_v43 = vadd.f32 1.0, %v585_v41 }
 0x127   : > { %v589_v44 = vpop.eup %588  ;;  %v758_v45 = vadd.f32 1.0, %v587_v42 }
 0x128   : > { %v591_v46 = vpop.eup %590  ;;  %v365_v47 = vmul.f32 %v589_v44, %v360_v39  ;;  %592 = vrcp.f32 %v756_v43  ;;  %vm370_vm2 = vweird.f32 %v589_v44  ;;  %v403_v2 = vand.u32 2147483647, %v756_v43 }
 0x129   : > { %v380_v48 = vmul.f32 %v591_v46, %v361_v40  ;;  %594 = vrcp.f32 %v758_v45  ;;  %vm385_vm4 = vweird.f32 %v591_v46  ;;  %vm371_vm5 = vmor %vm369_vm1, %vm370_vm2  ;;  %v405_v5 = vand.u32 2147483648, %v756_v43 }
 0x12a   : > { %v366_v49 = vsub.f32 1.0, %v365_v47  ;;  %vm386_vm8 = vmor %vm384_vm3, %vm385_vm4  ;;  %vm399_vm11 = vweird.f32 %v756_v43  ;;  %v418_v12 = vand.u32 2147483647, %v758_v45  ;;  %v420_v13 = vand.u32 2147483648, %v758_v45 }
 0x12b   : > { %v381_v52 = vsub.f32 1.0, %v380_v48  ;;  %v406_v17 = vor.u32 1.1754944e-38, %v405_v5  ;;  %vm414_vm15 = vweird.f32 %v758_v45  ;;  %vm404_vm0 = vcmp.eq.f32.partialorder %v403_v2, 8.507059e+37 }
 0x12c   : > { %v367_v53 = vmul.f32 %v589_v44, %v366_v49  ;;  %v421_v20 = vor.u32 1.1754944e-38, %v420_v13  ;;  %vm419_vm2 = vcmp.eq.f32.partialorder %v418_v12, 8.507059e+37 }
 0x12d   : > { %v382_v56 = vmul.f32 %v591_v46, %v381_v52 }
 0x12e   : > { %v593_v57 = vpop.eup %592  ;;  %v368_v58 = vadd.f32 %v589_v44, %v367_v53 }
 0x12f   : > { %v383_v60 = vadd.f32 %v591_v46, %v382_v56  ;;  %v395_v61 = vmul.f32 %v593_v57, %v756_v43  ;;  %v595_v62 = vpop.eup %594  ;;  %vm400_vm9 = vweird.f32 %v593_v57 }
 0x130   : > { %v372_v0 = vsel %vm371_vm5, %v589_v44, %v368_v58  ;;  %v410_v3 = vmul.f32 %v595_v62, %v758_v45  ;;  %vm415_vm13 = vweird.f32 %v595_v62  ;;  %vm401_vm14 = vmor %vm399_vm11, %vm400_vm9 }
 0x131   : > { %v396_v1 = vsub.f32 1.0, %v395_v61  ;;  %v377_v4 = vsel %vm374_vm6, %v376_v59, %v372_v0  ;;  %v387_v6 = vsel %vm386_vm8, %v591_v46, %v383_v60  ;;  %vm416_vm1 = vmor %vm414_vm15, %vm415_vm13 }
 0x132   : > { %vm424_vm10 = vcmp.gt.f32.partialorder %v377_v4, 0.0  ;;  %v411_v8 = vsub.f32 1.0, %v410_v3  ;;  %v392_v9 = vsel %vm389_vm7, %v391_v63, %v387_v6 }
 0x133   : > { %v397_v7 = vmul.f32 %v593_v57, %v396_v1  ;;  %v527_v11 = vsel %vm424_vm10, 1.0, %v661_v10  ;;  %vm425_vm12 = vcmp.gt.f32.partialorder %v392_v9, 0.0 }
 0x134   : > { %436 = vst [vmem:[%s216_s26] sm:$0xff] %v527_v11  ;;  %v412_v15 = vmul.f32 %v595_v62, %v411_v8  ;;  %v528_v16 = vsel %vm425_vm12, 1.0, %v661_v10 }
 0x135   : > { %v398_v14 = vadd.f32 %v593_v57, %v397_v7  ;;  %437 = vst [vmem:[%s216_s26 + $0x8] sm:$0xff] %v528_v16 }
 0x136   : > { %v413_v18 = vadd.f32 %v595_v62, %v412_v15 }
 0x137   : > { %v402_v19 = vsel %vm401_vm14, %v593_v57, %v398_v14 }
 0x138   : > { %v407_v21 = vsel %vm404_vm0, %v406_v17, %v402_v19  ;;  %v417_v22 = vsel %vm416_vm1, %v595_v62, %v413_v18 }
 0x139   : > { %vm426_vm3 = vcmp.gt.f32.partialorder %v407_v21, 0.0  ;;  %v422_v23 = vsel %vm419_vm2, %v421_v20, %v417_v22 }
 0x13a   : > { %v529_v24 = vsel %vm426_vm3, 1.0, %v661_v10  ;;  %vm427_vm4 = vcmp.gt.f32.partialorder %v422_v23, 0.0 }
 0x13b   : > { %438 = vst [vmem:[%s216_s26 + $0x10] sm:$0xff] %v529_v24  ;;  %v530_v25 = vsel %vm427_vm4, 1.0, %v661_v10 }
 0x13c   : > { %439 = vst [vmem:[%s216_s26 + $0x18] sm:$0xff] %v530_v25 }
 0x13d   : > { %623 = shalt.err (!%p620_p3)
}
 0x13e   : > { %537 = dma.vmem_to_hbm [thread:$0]  (%p730_p5), %s455_s7, 512, %s457_s8, %s441_s9  }
 0x13f PF: > { %p543_p4 = scmp.ge.s32.totalorder %s658_s21, 2  ;;  %s468_s17 = sand.u32 1, %s646_s18  }
 0x140   : > { %s469_s23 = scalar_lea.sflag [#allocation3], %s468_s17 }
 0x141   : > { %p540_p7 = pnand %p543_p4, %p734_p6 }
 0x143   : > { %p541_p8 = pneg %p540_p7 }
 0x145   : > { %641 = dma.done.wait (%p541_p8), %s469_s23, 512  }
 0x146   : > { %643 = vsyncadd (%p541_p8), %s469_s23, 4294966784  ;;  %p15_p9 = scmp.ge.s32.totalorder %s717_s24, 6   ;;  %s816_s18 = smov %s650_s19 }
 0x147   : > { %s817_s19 = smov %s654_s20  ;;  %s818_s20 = smov %s728_s27 }
 0x148   : > { %s819_s21 = smov %s717_s24  ;;  %17 = sbr.rel (!%p15_p9) target bundleno = 3 (0x3), region = 75 }
 0x14d   :  { %475 = vsyncpa [#allocation3], 1 }
 0x14e   :  { %477 = vsyncpa [#allocation3 + $0x1], 1 }

</bundles_post_ra>
